<compile_context>
chip_gen: v5e
topology: v5e:2x2
jax: 0.10.0
libtpu: 0.0.40
codegen_flags: <defaults>
</compile_context>

<pallas_src>
import functools
import math

import jax
import jax.numpy as jnp
from jax import lax
from jax.experimental import pallas as pl
from jax.experimental.pallas import tpu as pltpu

_LANE = 128
_SUBLANE = 8
_SLAB_VMEM_BUDGET = 28 * 1024 * 1024   # max estimated in-flight VMEM footprint per block


def _round_up(a, b):
    return (a + b - 1) // b * b


def _target_block_elems():
    """Per-generation soft target for per-block element count (f32 working set)."""
    try:
        kind = jax.devices()[0].device_kind.lower()
    except Exception:
        kind = ""
    if "v6" in kind:            # v6e / Trillium: 128 MiB VMEM, plenty of headroom
        return 1024 * 1024      # ~4 MiB f32 data block
    return 512 * 1024           # v5e / v7x / unknown: ~2 MiB f32 data block


def _block_footprint_bytes(rows, cols, itemsize):
    """Estimated VMEM footprint of one block: 2x double-buffered input +
    2x double-buffered output (input dtype) + ~3 full-block f32 temporaries."""
    rows_pad = _round_up(max(rows, 1), _SUBLANE)
    cols_pad = _round_up(max(cols, 1), _LANE)
    return rows_pad * cols_pad * (4 * itemsize + 3 * 4)


def _logsoftmax_block_kernel(x_ref, o_ref):
    # Block holds TB complete slices as rows; reduce over the flattened spatial
    # axis.  Rows of a partial boundary block contain garbage but are fully
    # independent and dropped on write-back, so no masking is needed.
    x = x_ref[...].astype(jnp.float32)
    m = jnp.max(x, axis=-1, keepdims=True)
    s = jnp.sum(jnp.exp(x - m), axis=-1, keepdims=True)
    o_ref[...] = (x - (m + jnp.log(s))).astype(o_ref.dtype)


def _logsoftmax_chunked_kernel(x_ref, o_ref, m_sc, s_sc, *, s_total, chunk, needs_mask):
    # Two sweeps over the spatial chunks of a row block (grid axes: p, c):
    #   p == 0: accumulate running (max, sum-exp) into VMEM scratch (online softmax)
    #   p == 1: write  x - m - log(s)
    p = pl.program_id(1)
    c = pl.program_id(2)

    @pl.when((p == 0) & (c == 0))
    def _init():
        m_sc[...] = jnp.full_like(m_sc, -jnp.inf)
        s_sc[...] = jnp.zeros_like(s_sc)

    x = x_ref[...].astype(jnp.float32)          # (TB, chunk)
    if needs_mask:
        col = lax.broadcasted_iota(jnp.int32, x.shape, dimension=1)
        xm = jnp.where(c * chunk + col < s_total, x, -jnp.inf)
    else:
        xm = x

    @pl.when(p == 0)
    def _accumulate():
        m_prev = m_sc[...]
        m_new = jnp.maximum(m_prev, jnp.max(xm, axis=-1, keepdims=True))
        s_sc[...] = (s_sc[...] * jnp.exp(m_prev - m_new)
                     + jnp.sum(jnp.exp(xm - m_new), axis=-1, keepdims=True))
        m_sc[...] = m_new

    @pl.when(p == 1)
    def _write():
        # Out-of-range columns of the last (partial) chunk are dropped on write-back.
        o_ref[...] = (x - (m_sc[...] + jnp.log(s_sc[...]))).astype(o_ref.dtype)


def log_softmax_nd(x, spatial_dims, *, donate_input=False, _slab_budget_bytes=None):
    """Pallas equivalent of LogSoftmaxND(spatial_dims).forward(x)."""
    assert spatial_dims in (2, 3)
    assert x.ndim >= spatial_dims
    orig_shape = x.shape
    S = int(math.prod(orig_shape[-spatial_dims:]))
    n = int(math.prod(orig_shape[:-spatial_dims]))       # == 1 if no leading dims
    itemsize = jnp.dtype(x.dtype).itemsize

    xf = x.reshape(n, S)                                  # free view, no padding
    budget = _slab_budget_bytes or _SLAB_VMEM_BUDGET
    target_elems = _target_block_elems()
    tb_min = n if n < _SUBLANE else _SUBLANE

    extra_call_kwargs = {}
    if donate_input:
        # Only safe/beneficial when the caller no longer needs x (otherwise XLA
        # would insert a defensive copy); off by default.
        extra_call_kwargs["input_output_aliases"] = {0: 0}

    if _block_footprint_bytes(tb_min, S, itemsize) <= budget:
        # ---- Single-pass path: several complete slices per block, block = (TB, S) ----
        if n <= _SUBLANE:
            TB = n
        else:
            TB = max(_SUBLANE, (max(1, target_elems // max(S, 1)) // _SUBLANE) * _SUBLANE)
            row_fp = _round_up(S, _LANE) * (4 * itemsize + 12)
            TB = min(TB, max(_SUBLANE, (budget // row_fp) // _SUBLANE * _SUBLANE))
            # keep >= ~8 row blocks when possible (both v7x TensorCores stay busy)
            TB = min(TB, max(_SUBLANE, _round_up(pl.cdiv(n, 8), _SUBLANE)))
            TB = min(TB, _round_up(n, _SUBLANE))
        grid = (pl.cdiv(n, TB),)
        in_specs = [pl.BlockSpec((TB, S), lambda i: (i, 0))]
        out_specs = pl.BlockSpec((TB, S), lambda i: (i, 0))
        scratch_shapes = ()
        kernel = _logsoftmax_block_kernel
        dims_sem = ("parallel",)
        bytes_accessed = 2 * n * S * itemsize
        block_cols = S
    else:
        # ---- Chunked two-pass fallback for huge slices (VMEM-bounded) ----
        # TODO(synk): for n < 8 with huge ragged slices the (TB<8, Sc) layout
        # underutilizes sublanes; a (rows,128) repack would fix it when S%128==0.
        TB = tb_min
        tb_pad = max(_round_up(TB, _SUBLANE), _SUBLANE)
        sc_fit = max(_LANE, (max(1, target_elems // tb_pad) // _LANE) * _LANE)
        sc_budget = max(_LANE, (budget // (tb_pad * (4 * itemsize + 12))) // _LANE * _LANE)
        Sc = min(sc_fit, sc_budget)
        C = pl.cdiv(S, Sc)
        needs_mask = (S % Sc) != 0
        grid = (pl.cdiv(n, TB), 2, C)
        in_specs = [pl.BlockSpec((TB, Sc), lambda i, p, c: (i, c))]
        out_specs = pl.BlockSpec((TB, Sc), lambda i, p, c: (i, c * p))
        scratch_shapes = (pltpu.VMEM((TB, 1), jnp.float32),
                          pltpu.VMEM((TB, 1), jnp.float32))
        kernel = functools.partial(_logsoftmax_chunked_kernel,
                                   s_total=S, chunk=Sc, needs_mask=needs_mask)
        dims_sem = ("parallel", "arbitrary", "arbitrary")
        bytes_accessed = 3 * n * S * itemsize     # 2 reads + 1 write
        block_cols = Sc

    cost = pl.CostEstimate(
        flops=5 * n * S,
        transcendentals=n * S + n,                # exp per element + one log per slice
        bytes_accessed=bytes_accessed,
    )

    compiler_kwargs = dict(dimension_semantics=dims_sem)
    vmem_needed = _block_footprint_bytes(TB, block_cols, itemsize) + (1 << 20)
    if vmem_needed > 14 * 1024 * 1024:            # smallest scoped default is 16 MiB (v5e)
        compiler_kwargs["vmem_limit_bytes"] = int(
            min(max(vmem_needed * 5 // 4, 16 * 1024 * 1024), 56 * 1024 * 1024))

    out = pl.pallas_call(
        kernel,
        out_shape=jax.ShapeDtypeStruct((n, S), x.dtype),
        grid_spec=pltpu.PrefetchScalarGridSpec(
            num_scalar_prefetch=0,
            grid=grid,
            in_specs=in_specs,
            out_specs=out_specs,
            scratch_shapes=scratch_shapes,
        ),
        compiler_params=pltpu.CompilerParams(**compiler_kwargs),
        cost_estimate=cost,
        **extra_call_kwargs,
    )(xf)

    return out.reshape(orig_shape)


def _reference(x, spatial_dims):
    dims = tuple(range(x.ndim - spatial_dims, x.ndim))
    m = jnp.max(x, axis=dims, keepdims=True)
    s = jnp.sum(jnp.exp(x - m), axis=dims, keepdims=True)
    return x - m - jnp.log(s)


if __name__ == "__main__":
    key = jax.random.PRNGKey(0)
    k2, k3, k4, k5 = jax.random.split(key, 4)

    # spatial_dims = 2 : (B, C, H, W)
    x2 = jax.random.normal(k2, (2, 4, 16, 16), dtype=jnp.float32)
    y2 = jax.block_until_ready(log_softmax_nd(x2, spatial_dims=2))
    assert jnp.allclose(y2, _reference(x2, 2), atol=1e-5, rtol=1e-5)

    # spatial_dims = 3 : (B, C, D, H, W)
    x3 = jax.random.normal(k3, (2, 4, 8, 16, 16), dtype=jnp.float32)
    y3 = jax.block_until_ready(log_softmax_nd(x3, spatial_dims=3))
    assert jnp.allclose(y3, _reference(x3, 3), atol=1e-5, rtol=1e-5)

    # ragged spatial extent (partial lane block, no padding pass, no output slice)
    x4 = jax.random.normal(k4, (2, 3, 7, 9), dtype=jnp.float32)
    y4 = jax.block_until_ready(log_softmax_nd(x4, spatial_dims=2))
    assert jnp.allclose(y4, _reference(x4, 2), atol=1e-5, rtol=1e-5)

    # force the chunked two-pass (online-softmax) fallback on a small ragged
    # shape by shrinking the VMEM budget; exercises the in-kernel column mask.
    x5 = jax.random.normal(k5, (2, 4, 16, 33), dtype=jnp.float32)
    y5 = jax.block_until_ready(
        log_softmax_nd(x5, spatial_dims=2, _slab_budget_bytes=64 * 1024))
    assert jnp.allclose(y5, _reference(x5, 2), atol=1e-5, rtol=1e-5)

    print("KERNEL_OK")
</pallas_src>

<mosaic_0001>
module attributes {stable_mosaic.version = 11 : i64} {
  func.func @_logsoftmax_block_kernel(%arg0: i32, %arg1: memref<8x256xf32, #tpu.memory_space<vmem>>, %arg2: memref<8x256xf32, #tpu.memory_space<vmem>>) attributes {dimension_semantics = [#tpu.dimension_semantics<parallel>], iteration_bounds = array<i64: 1>, scalar_prefetch = 0 : i64, scratch_operands = 0 : i64, tpu.core_type = #tpu.core_type<tc>, window_params = [{transform_indices = @transform_0, window_bounds = array<i64: 8, 256>}, {transform_indices = @transform_1, window_bounds = array<i64: 8, 256>}]} {
    %c0 = arith.constant 0 : index
    %c0_0 = arith.constant 0 : index
    %0 = vector.load %arg1[%c0, %c0_0] : memref<8x256xf32, #tpu.memory_space<vmem>>, vector<8x256xf32>
    %cst = arith.constant dense<0xFF800000> : vector<8xf32>
    %1 = vector.multi_reduction <maximumf>, %0, %cst [1] : vector<8x256xf32> to vector<8xf32>
    %2 = vector.shape_cast %1 : vector<8xf32> to vector<8x1xf32>
    %3 = vector.broadcast %2 : vector<8x1xf32> to vector<8x256xf32>
    %4 = arith.subf %0, %3 : vector<8x256xf32>
    %5 = math.exp %4 : vector<8x256xf32>
    %cst_1 = arith.constant dense<0.000000e+00> : vector<8xf32>
    %6 = vector.multi_reduction <add>, %5, %cst_1 [1] : vector<8x256xf32> to vector<8xf32>
    %7 = vector.shape_cast %6 : vector<8xf32> to vector<8x1xf32>
    %8 = math.log %7 : vector<8x1xf32>
    %9 = arith.addf %2, %8 : vector<8x1xf32>
    %10 = vector.broadcast %9 : vector<8x1xf32> to vector<8x256xf32>
    %11 = arith.subf %0, %10 : vector<8x256xf32>
    %c0_2 = arith.constant 0 : index
    %c0_3 = arith.constant 0 : index
    %12 = vector.load %arg2[%c0_2, %c0_3] : memref<8x256xf32, #tpu.memory_space<vmem>>, vector<8x256xf32>
    tpu.vector_store %arg2[%c0_2, %c0_3], %11 {strides = array<i32>} : memref<8x256xf32, #tpu.memory_space<vmem>>, vector<8x256xf32>,
    return
  }
  func.func @transform_0(%arg0: i32) -> (i32, i32) {
    %c0_i32 = arith.constant 0 : i32
    %c0_i32_0 = arith.constant 0 : i32
    return %arg0, %c0_i32 : i32, i32
  }
  func.func @transform_1(%arg0: i32) -> (i32, i32) {
    %c0_i32 = arith.constant 0 : i32
    %c0_i32_0 = arith.constant 0 : i32
    return %arg0, %c0_i32 : i32, i32
  }
}

</mosaic_0001>

<bundles_post_ra>
// kernel: tpu_custom_call.1
= control target key start
LH: loop header
LB: loop body
LE: loop exit
PB: predicated region body
PF: predicated region fallthrough
CT: control target
= control target key end

     0   :  { %6 = vsyncpa [#allocation3], 0  ;;  %s139_s0 = inlined_call_operand.hbm [shape: f32[8,256], index: 0, kind: input, shape index: {}]   ;;  %s140_s1 = inlined_call_operand.hbm [shape: f32[8,256], index: 1, kind: output, shape index: {}]  }
   0x1   :  { %7 = vsyncpa [#allocation4], 0  ;;  %s13_s8 = sshll.u32 %s139_s0, 4  ;;  %s121_s9 = smov [#allocation2]   ;;  %s14_s8 = int_to_ptr.hbm [resolvable:$true] %s13_s8 }
   0x2   :  { %s15_s10 = sshll.u32 %s121_s9, 4  ;;  %s16_s10 = int_to_ptr.vmem [resolvable:$true] %s15_s10 }
   0x3   :  { %18 = dma.hbm_to_vmem [thread:$0]  %s14_s8, 256, %s16_s10, [#allocation3]  }
   0x4   :  { %117 = dma.done.wait [#allocation3], 256  }
   0x5   :  { %118 = vsyncadd [#allocation3], 4294967040  ;;  %v23_v0 = vld [vmem:[#allocation2] sm:$0xff]  ;;  %v24_v1 = vld [vmem:[#allocation2 + $0x8] sm:$0xff]  ;;  %s122_s0 = smov [#allocation5]   ;;  %s51_s14 = sshll.u32 %s140_s1, 4  ;;  %s52_s14 = int_to_ptr.hbm [resolvable:$true] %s51_s14 }
   0x6   :  { %v25_v2 = vmax.f32 %v23_v0, %v24_v1  ;;  %s49_s11 = sshll.u32 %s122_s0, 4  ;;  %s50_s11 = int_to_ptr.vmem [resolvable:$true] %s49_s11 }
   0x8   :  { %26 = vmax.xlane.f32.xlu0 %v25_v2 }
  0x7b   :  { %v27_v3 = vpop.xlane.xlu0 %26 }
  0x7c   :  { %v28_v4 = vsub.f32 %v23_v0, %v27_v3  ;;  %v29_v5 = vsub.f32 %v24_v1, %v27_v3 }
  0x7e   :  { %v30_v6 = vmul.f32 1.442695, %v28_v4  ;;  %v32_v7 = vmul.f32 1.442695, %v29_v5 }
  0x80   :  { %63 = vpow2.f32 %v30_v6 }
  0x81   :  { %65 = vpow2.f32 %v32_v7 }
  0x86   :  { %v64_v8 = vpop.eup %63 }
  0x87   :  { %v66_v9 = vpop.eup %65 }
  0x88   :  { %v34_v10 = vadd.f32 %v66_v9, %v64_v8 }
  0x8a   :  { %35 = vadd.xlane.f32.xlu0 %v34_v10 }
  0xfd   :  { %v36_v11 = vpop.xlane.xlu0 %35 }
  0xfe   :  { %67 = vlog2.f32 %v36_v11 }
 0x104   :  { %v68_v12 = vpop.eup %67 }
 0x105   :  { %v38_v13 = vmul.f32 0.6931472, %v68_v12 }
 0x107   :  { %v39_v14 = vadd.f32 %v38_v13, %v27_v3 }
 0x109   :  { %v40_v15 = vsub.f32 %v23_v0, %v39_v14  ;;  %v41_v16 = vsub.f32 %v24_v1, %v39_v14 }
 0x10b   :  { %42 = vst [vmem:[#allocation5] sm:$0xff] %v40_v15 }
 0x10c   :  { %43 = vst [vmem:[#allocation5 + $0x8] sm:$0xff] %v41_v16 }
 0x10d   :  { %54 = dma.vmem_to_hbm [thread:$0]  %s50_s11, 256, %s52_s14, [#allocation4]  }
 0x10e   :  { %119 = dma.done.wait [#allocation4], 256  }
 0x10f   :  { %120 = vsyncadd [#allocation4], 4294967040 }
 0x110   :  { %59 = vsyncpa [#allocation3], 1 }
 0x111   :  { %60 = vsyncpa [#allocation4], 1 }

</bundles_post_ra>
